<compile_context>
chip_gen: v6e
topology: v6e:2x2x1
jax: 0.10.0
libtpu: 0.0.40
codegen_flags: <defaults>
</compile_context>

<pallas_src>
import functools

import jax
import jax.numpy as jnp
from jax.experimental import pallas as pl
from jax.experimental.pallas import tpu as pltpu


def _round_up(x, m):
    return ((x + m - 1) // m) * m


def _embed_kernel(ids_ref, tab_ref, out_ref, *, num_ids):
    """One grid step: gather+sum merged-table rows for a block of T tokens.

    ids_ref: (T, num_ids) int32 ids, already offset into the merged table.
    tab_ref: (Vp, H) float32 merged table, fully VMEM-resident.
    out_ref: (T, H) float32.
    """
    T = out_ref.shape[0]
    Vp = tab_ref.shape[0]
    ids = ids_ref[...]                                        # (T, num_ids)
    iota = jax.lax.broadcasted_iota(jnp.int32, (T, Vp), 1)    # (T, Vp)

    # Combined one-hot: each id column hits a disjoint row range of the merged
    # table, so summing the compares is an exact OR.  Out-of-range ids produce
    # an all-zero row (output row = 0) -- intentional, documented behavior.
    onehot = (iota == ids[:, 0:1]).astype(jnp.float32)
    for c in range(1, num_ids):
        onehot += (iota == ids[:, c:c + 1]).astype(jnp.float32)

    # Single MXU matmul performs the gather AND the multi-table add at once.
    # HIGHEST precision keeps the gathered f32 values bit-exact.
    out_ref[...] = jnp.dot(
        onehot, tab_ref[...],
        preferred_element_type=jnp.float32,
        precision=jax.lax.Precision.HIGHEST,
    ).astype(out_ref.dtype)


def _choose_block(n, block_tokens):
    """Pick tokens-per-step T and the padded token count n_pad."""
    bt = max(8, (int(block_tokens) // 8) * 8)
    if n % 8 == 0 and n > 0:
        # Prefer >= 2 grid steps so v7x can shard the parallel axis over both
        # TensorCores, and pick a divisor of n so out_shape is exactly (n, H)
        # (no padded tail -> no post-kernel slice copy).
        target = n if n < 16 else n // 2
        target = max(8, min(bt, (target // 8) * 8))
        T = 8
        d = 16
        while d <= target:
            if n % d == 0:
                T = d
            d += 8
        return T, n
    # Ragged n: pad to a multiple of T (small shapes only; sliced off after).
    T = min(bt, _round_up(max(n, 1), 8))
    return T, _round_up(max(n, 1), T)


@functools.partial(jax.jit, static_argnames=("use_turn", "block_tokens"))
def text_embedder_forward(token_inp, pos_inp, turn_inp,
                          token_table, pos_table, turn_table, text_embedding,
                          use_turn=True, block_tokens=2048):
    """Pallas implementation of TextEmbedder.forward (dropout = eval mode)."""
    B, S = token_inp.shape
    V_tok, H = token_table.shape
    V_pos = pos_table.shape[0]
    n = B * S

    # --- Merge tables (text_embedding bias folded into the token rows). ---
    parts = [token_table.astype(jnp.float32)
             + text_embedding[None, :].astype(jnp.float32),
             pos_table.astype(jnp.float32)]
    offs = [0, V_tok]
    if use_turn:
        parts.append(turn_table.astype(jnp.float32))
        offs.append(V_tok + V_pos)
    tab = jnp.concatenate(parts, axis=0)
    V_total = tab.shape[0]
    Vp = _round_up(V_total, 128)          # lane-dense one-hot / full MXU K
    if Vp != V_total:
        tab = jnp.pad(tab, ((0, Vp - V_total), (0, 0)))

    # --- Pack (offset) id streams into one (n_pad, C) array: 1 DMA/step. ---
    streams = [token_inp, pos_inp] + ([turn_inp] if use_turn else [])
    ids = jnp.stack([s.reshape(n).astype(jnp.int32) + o
                     for s, o in zip(streams, offs)], axis=1)
    C = ids.shape[1]

    T, n_pad = _choose_block(n, block_tokens)
    if n_pad != n:
        # Padding rows gather merged row 0; they are sliced off below.
        ids = jnp.pad(ids, ((0, n_pad - n), (0, 0)))
    num_blocks = n_pad // T

    kernel = functools.partial(_embed_kernel, num_ids=C)

    out_flat = pl.pallas_call(
        kernel,
        out_shape=jax.ShapeDtypeStruct((n_pad, H), jnp.float32),
        grid_spec=pltpu.PrefetchScalarGridSpec(
            num_scalar_prefetch=0,
            grid=(num_blocks,),
            in_specs=[
                pl.BlockSpec((T, C), lambda i: (i, 0)),     # packed ids
                pl.BlockSpec((Vp, H), lambda i: (0, 0)),    # resident table
            ],
            out_specs=pl.BlockSpec((T, H), lambda i: (i, 0))),
        compiler_params=pltpu.CompilerParams(
            dimension_semantics=("parallel",)),
    )(ids, tab)

    if n_pad != n:
        out_flat = out_flat[:n]
    return out_flat.reshape(B, S, H)


def _xavier_uniform(key, shape):
    fan_in, fan_out = shape[0], shape[1]
    bound = jnp.sqrt(6.0 / (fan_in + fan_out))
    return jax.random.uniform(key, shape, jnp.float32, -bound, bound)


if __name__ == "__main__":
    # Module hyperparameters (small, consistent with the forward pass).
    hidden_dim = 32
    num_token_embeddings = 50
    num_pos_embeddings = 64
    num_turn_embeddings = 4
    B, S = 2, 8

    key = jax.random.PRNGKey(0)
    k_tok, k_pos, k_turn, k_text, k_i0, k_i1, k_i2 = jax.random.split(key, 7)

    # Deterministic parameter init mirroring the PyTorch __init__.
    token_table = _xavier_uniform(k_tok, (num_token_embeddings, hidden_dim))
    pos_table = _xavier_uniform(k_pos, (num_pos_embeddings, hidden_dim))
    turn_table = _xavier_uniform(k_turn, (num_turn_embeddings, hidden_dim))
    text_embedding = 0.02 * jax.random.normal(k_text, (hidden_dim,), jnp.float32)

    # Example inputs.
    token_inp = jax.random.randint(k_i0, (B, S), 0, num_token_embeddings, jnp.int32)
    pos_inp = jnp.broadcast_to(jnp.arange(S, dtype=jnp.int32), (B, S))
    turn_inp = jax.random.randint(k_i2, (B, S), 0, num_turn_embeddings, jnp.int32)

    out = text_embedder_forward(token_inp, pos_inp, turn_inp,
                                token_table, pos_table, turn_table,
                                text_embedding, use_turn=True)
    out = jax.block_until_ready(out)

    # Pure-JAX reference (eval-mode dropout = identity).
    ref = (jnp.take(token_table, token_inp, axis=0)
           + jnp.take(pos_table, pos_inp, axis=0)
           + text_embedding
           + jnp.take(turn_table, turn_inp, axis=0))
    assert out.shape == (B, S, hidden_dim)
    assert jnp.allclose(out, ref, atol=1e-5, rtol=1e-5), "mismatch vs. reference"

    # Also check the use_turn=False branch.
    out_nt = jax.block_until_ready(
        text_embedder_forward(token_inp, pos_inp, turn_inp,
                              token_table, pos_table, turn_table,
                              text_embedding, use_turn=False))
    ref_nt = (jnp.take(token_table, token_inp, axis=0)
              + jnp.take(pos_table, pos_inp, axis=0)
              + text_embedding)
    assert jnp.allclose(out_nt, ref_nt, atol=1e-5, rtol=1e-5), \
        "mismatch vs. reference (no turn)"

    print("KERNEL_OK")
</pallas_src>

<mosaic_0001>
module attributes {stable_mosaic.version = 11 : i64} {
  func.func @_embed_kernel(%arg0: i32, %arg1: memref<8x3xi32, #tpu.memory_space<vmem>>, %arg2: memref<128x32xf32, #tpu.memory_space<vmem>>, %arg3: memref<8x32xf32, #tpu.memory_space<vmem>>) attributes {dimension_semantics = [#tpu.dimension_semantics<parallel>], iteration_bounds = array<i64: 2>, scalar_prefetch = 0 : i64, scratch_operands = 0 : i64, tpu.core_type = #tpu.core_type<tc>, window_params = [{transform_indices = @transform_0, window_bounds = array<i64: 8, 3>}, {pipeline_mode = #tpu.pipeline_mode<synchronous>, transform_indices = @transform_1, window_bounds = array<i64: 128, 32>}, {transform_indices = @transform_2, window_bounds = array<i64: 8, 32>}]} {
    %c0 = arith.constant 0 : index
    %c0_0 = arith.constant 0 : index
    %0 = vector.load %arg1[%c0, %c0_0] : memref<8x3xi32, #tpu.memory_space<vmem>>, vector<8x3xi32>
    %1 = tpu.iota {dimensions = array<i32: 1>} : vector<8x128xi32>
    %2 = vector.extract_strided_slice %0 {offsets = [0, 0], sizes = [8, 1], strides = [1, 1]} : vector<8x3xi32> to vector<8x1xi32>
    %3 = vector.broadcast %2 : vector<8x1xi32> to vector<8x128xi32>
    %4 = arith.cmpi eq, %1, %3 : vector<8x128xi32>
    %5 = arith.extui %4 : vector<8x128xi1> to vector<8x128xi32>
    %6 = arith.sitofp %5 : vector<8x128xi32> to vector<8x128xf32>
    %7 = vector.extract_strided_slice %0 {offsets = [0, 1], sizes = [8, 1], strides = [1, 1]} : vector<8x3xi32> to vector<8x1xi32>
    %8 = vector.broadcast %7 : vector<8x1xi32> to vector<8x128xi32>
    %9 = arith.cmpi eq, %1, %8 : vector<8x128xi32>
    %10 = arith.extui %9 : vector<8x128xi1> to vector<8x128xi32>
    %11 = arith.sitofp %10 : vector<8x128xi32> to vector<8x128xf32>
    %12 = arith.addf %6, %11 : vector<8x128xf32>
    %13 = vector.extract_strided_slice %0 {offsets = [0, 2], sizes = [8, 1], strides = [1, 1]} : vector<8x3xi32> to vector<8x1xi32>
    %14 = vector.broadcast %13 : vector<8x1xi32> to vector<8x128xi32>
    %15 = arith.cmpi eq, %1, %14 : vector<8x128xi32>
    %16 = arith.extui %15 : vector<8x128xi1> to vector<8x128xi32>
    %17 = arith.sitofp %16 : vector<8x128xi32> to vector<8x128xf32>
    %18 = arith.addf %12, %17 : vector<8x128xf32>
    %c0_1 = arith.constant 0 : index
    %c0_2 = arith.constant 0 : index
    %19 = vector.load %arg2[%c0_1, %c0_2] : memref<128x32xf32, #tpu.memory_space<vmem>>, vector<128x32xf32>
    %cst = arith.constant dense<0.000000e+00> : vector<8x32xf32>
    %20 = tpu.matmul %18, %19, %cst {dimension_numbers = #tpu.dot_dimension_numbers<[1], [0], [0], [1], [0, 0, 1, 1], [], []>, precision = #tpu.contract_precision<fp32>} : vector<8x128xf32>, vector<128x32xf32>, vector<8x32xf32> -> vector<8x32xf32>
    %c0_3 = arith.constant 0 : index
    %c0_4 = arith.constant 0 : index
    %21 = vector.load %arg3[%c0_3, %c0_4] : memref<8x32xf32, #tpu.memory_space<vmem>>, vector<8x32xf32>
    tpu.vector_store %arg3[%c0_3, %c0_4], %20 {strides = array<i32>} : memref<8x32xf32, #tpu.memory_space<vmem>>, vector<8x32xf32>,
    return
  }
  func.func @transform_0(%arg0: i32) -> (i32, i32) {
    %c0_i32 = arith.constant 0 : i32
    %c0_i32_0 = arith.constant 0 : i32
    return %arg0, %c0_i32 : i32, i32
  }
  func.func @transform_1(%arg0: i32) -> (i32, i32) {
    %c0_i32 = arith.constant 0 : i32
    %c0_i32_0 = arith.constant 0 : i32
    %c0_i32_1 = arith.constant 0 : i32
    return %c0_i32, %c0_i32_0 : i32, i32
  }
  func.func @transform_2(%arg0: i32) -> (i32, i32) {
    %c0_i32 = arith.constant 0 : i32
    %c0_i32_0 = arith.constant 0 : i32
    return %arg0, %c0_i32 : i32, i32
  }
}

</mosaic_0001>

<bundles_post_ra>
// kernel: text_embedder_forward.1
= control target key start
LH: loop header
LB: loop body
LE: loop exit
PB: predicated region body
PF: predicated region fallthrough
CT: control target
= control target key end

     0   :  { %7 = vsyncpa [#allocation3], 0  ;;  %s1849_s0 = inlined_call_operand.vmem [shape: s32[16,3], index: 0, kind: input, shape index: {}]   ;;  %s1850_s1 = inlined_call_operand.vmem [shape: f32[128,32], index: 1, kind: input, shape index: {}]   ;;  %s1851_s2 = inlined_call_operand.hbm [shape: f32[16,32], index: 2, kind: output, shape index: {}]  }
   0x1   :  { %9 = vsyncpa [#allocation3 + $0x1], 0  ;;  %s1350_s9 = smov 0   ;;  %s1352_s10 = smov 0  }
   0x2   :  { %s1354_s11 = smov 0   ;;  %s1356_s12 = smov 0  }
   0x3 LB: > { %s1371_s13 = sadd.s32 4294967295, %s1327_s12   ;;  %s894_s14 = sadd.s32 4294967294, %s1327_s12   ;;  %s1327_s12 = sphi %s1356_s12, %s1857_s12   ;;  %s1323_s11 = sphi %s1354_s11, %s1856_s11   ;;  %s1319_s10 = sphi %s1352_s10, %s1855_s10   ;;  %s1315_s9 = sphi %s1350_s9, %s1854_s9  }
   0x4   : > { %s1375_s15 = sadd.s32 1, %s1327_s12   ;;  %s69_s16 = sadd.s32 1, %s1323_s11 }
   0x5   : > { %s66_s17 = ssub.s32 %s1327_s12, %s1375_s15  ;;  %p79_p0 = scmp.ne.s32.totalorder %s1323_s11, %s1319_s10 }
   0x6   : > { %p67_p1 = scmp.eq.s32.totalorder %s66_s17, 0  ;;  %p80_p2 = scmp.eq.s32.totalorder %s1371_s13, 1 }
   0x7   : > { %p85_p3 = scmp.ne.s32.totalorder %s1319_s10, %s1315_s9  ;;  %p86_p4 = scmp.eq.s32.totalorder %s894_s14, 1 }
   0x8   : > { %s1386_s18 = scalar_select %p67_p1, %s1323_s11, %s69_s16  }
   0x9   : > { %p1388_p5 = por %p80_p2, %p79_p0  ;;  %p1392_p6 = por %p86_p4, %p85_p3 }
   0xa   : > { %p897_p7 = scmp.ge.s32.totalorder %s1327_s12, 1  ;;  %p114_p8 = scmp.lt.s32.totalorder %s1327_s12, 3 }
   0xc   : > { %p115_p9 = pnand %p897_p7, %p114_p8 }
   0xd   : > { %p135_p10 = scmp.lt.s32.totalorder (!%p115_p9), %s1371_s13, 1  ;;  %s132_s17 = sand.u32 (!%p115_p9), 1, %s1319_s10  }
   0xe   : > { %118 = sbr.rel (%p115_p9) target bundleno = 445 (0x1bd), region = 28  ;;  %s898_s21 = sshll.u32 (!%p115_p9), %s132_s17, 3 }
   0xf   : > { %s134_s23 = scalar_lea.vmem (!%p115_p9), [#allocation2], %s898_s21  ;;  %s822_s28 = scalar_lea.sflag (!%p115_p9), [#allocation3], %s132_s17 }
  0x10   : > { %s835_s24 = sshll.u32 (!%p115_p9), %s134_s23, 4  ;;  %s1334_s30 = smov (!%p115_p9), [#allocation2]   ;;  %s836_s24 = int_to_ptr.vmem [resolvable:$true] %s835_s24 }
  0x13   : > { %v177_v0 = vld [vmem:[%s1850_s1 + $0x78] sm:$0xff]  ;;  %v1329_v1 = vmov 0   ;;  %v1330_v2 = vmov 2   ;;  %v176_v4 = vld [vmem:[%s1850_s1 + $0x70] sm:$0xff]  ;;  %v175_v5 = vld [vmem:[%s1850_s1 + $0x68] sm:$0xff]  ;;  %s136_s29 = scalar_select %p135_p10, %s1371_s13, 1 }
  0x14   : > { %1263 = vset.pattern.permute.xlu0 %v1329_v1  ;;  %1265 = vset.pattern.permute.xlu1 %v1330_v2  ;;  %v1403_v3 = vand.u32 4294901760, %v177_v0  ;;  %v174_v6 = vld [vmem:[%s1850_s1 + $0x60] sm:$0xff]  ;;  %v1331_v7 = vmov 0.0   ;;  %v1416_v8 = vand.u32 4294901760, %v176_v4  ;;  %v1418_v9 = vand.u32 4294901760, %v175_v5  ;;  %v173_v11 = vld [vmem:[%s1850_s1 + $0x58] sm:$0xff] }
  0x15   : > { %1044 = vmatprep.subr.mxu1 %v1331_v7  ;;  %v1420_v10 = vand.u32 4294901760, %v174_v6  ;;  %1009 = vmatprep.subr.mxu0 %v1331_v7  ;;  %v172_v12 = vld [vmem:[%s1850_s1 + $0x50] sm:$0xff]  ;;  %v1433_v14 = vand.u32 4294901760, %v173_v11  ;;  %v171_v16 = vld [vmem:[%s1850_s1 + $0x48] sm:$0xff]  ;;  %v170_v17 = vld [vmem:[%s1850_s1 + $0x40] sm:$0xff]  ;;  %s899_s16 = sshll.u32 %s136_s29, 3 }
  0x16   : > { %v1430_v13 = vsub.f32 %v177_v0, %v1403_v3  ;;  %1010 = vmatpush3.msra.mxu0 %v1403_v3  ;;  %v1435_v15 = vand.u32 4294901760, %v172_v12  ;;  %v1444_v18 = vsub.f32 %v176_v4, %v1416_v8  ;;  %v1447_v19 = vsub.f32 %v175_v5, %v1418_v9  ;;  %s138_s22 = scalar_lea.vmem %s1849_s0, %s899_s16  ;;  %v169_v36 = vld [vmem:[%s1850_s1 + $0x38] sm:$0xff]  ;;  %v168_v40 = vld [vmem:[%s1850_s1 + $0x30] sm:$0xff]  ;;  %v167_v41 = vld [vmem:[%s1850_s1 + $0x28] sm:$0xff]  ;;  %s1267_s29 = scalar_lea.vmem %s836_s24, 128 }
  0x17   : > { %v1450_v20 = vsub.f32 %v174_v6, %v1420_v10  ;;  %1011 = vmatprep.subr.mxu0 %v1331_v7  ;;  %v1453_v21 = vand.u32 4294901760, %v171_v16  ;;  %v1460_v23 = vsub.f32 %v173_v11, %v1433_v14  ;;  %v1466_v25 = vand.u32 4294901760, %v170_v17  ;;  %v139_v26 = vld [vmem:[%s138_s22] sm:$0xff]  ;;  %v165_v52 = vld [vmem:[%s1850_s1 + $0x18] sm:$0xff]  ;;  %v164_v59 = vld [vmem:[%s1850_s1 + $0x10] sm:$0xff]  ;;  %s904_s22 = sshll.u32 %s1371_s13, 7  ;;  %p1268_p11 = scmp.ne.s32.totalorder %s836_s24, %s1267_s29 }
  0x18   : > { %v272_v22 = vand.u32 4294901760, %v1430_v13  ;;  %1012 = vmatpush3.msra.mxu0 %v1416_v8  ;;  %v1464_v24 = vsub.f32 %v172_v12, %v1435_v15  ;;  %v279_v27 = vand.u32 4294901760, %v1444_v18  ;;  %v286_v28 = vand.u32 4294901760, %v1447_v19  ;;  %143 = vperm.xlu0 %1263, %v139_v26   ;;  %v166_v44 = vld [vmem:[%s1850_s1 + $0x20] sm:$0xff]  ;;  %v163_v1 = vld [vmem:[%s1850_s1 + $0x8] sm:$0xff]  ;;  %s833_s27 = scalar_lea.hbm %s1851_s2, %s904_s22  ;;  %s1271_s13 = sshll.u32 %s1334_s30, 4  ;;  %s1272_s13 = int_to_ptr.vmem [resolvable:$false] %s1271_s13 }
  0x19   : > { %v293_v29 = vand.u32 4294901760, %v1450_v20  ;;  %1013 = vmatprep.subr.mxu0 %v1331_v7  ;;  %v1473_v30 = vsub.f32 %v171_v16, %v1453_v21  ;;  %156 = vperm.xlu1 %1265, %v139_v26   ;;  %v300_v32 = vand.u32 4294901760, %v1460_v23  ;;  %v1487_v35 = vsub.f32 %v170_v17, %v1466_v25  ;;  %v162_v16 = vld [vmem:[%s1850_s1] sm:$0xff]  ;;  %p1269_p12 = pnand %p1268_p11, %p1388_p5  ;;  %s1273_s3 = scalar_lea.vmem %s1272_s13, 256 }
  0x1a   : > { %v273_v31 = vsub.f32 %v1430_v13, %v272_v22  ;;  %v280_v33 = vsub.f32 %v1444_v18, %v279_v27  ;;  %v287_v34 = vsub.f32 %v1447_v19, %v286_v28  ;;  %1014 = vmatpush3.msra.mxu0 %v1418_v9  ;;  %v307_v39 = vand.u32 4294901760, %v1464_v24  ;;  %p1274_p0 = scmp.lt.s32.totalorder %s836_s24, %s1272_s13  ;;  %p1275_p1 = scmp.lt.s32.totalorder %s1273_s3, %s1267_s29 }
  0x1b   : > { %v294_v38 = vsub.f32 %v1450_v20, %v293_v29  ;;  %1015 = vmatprep.subr.mxu0 %v1331_v7  ;;  %v314_v43 = vand.u32 4294901760, %v1473_v30  ;;  %v1332_v45 = vmov 1   ;;  %v301_v47 = vsub.f32 %v1460_v23, %v300_v32  ;;  %p1270_p13 = pneg %p1269_p12 }
  0x1c   : > { %v274_v37 = vand.u32 4294901760, %v273_v31  ;;  %v281_v42 = vand.u32 4294901760, %v280_v33  ;;  %1016 = vmatpush3.msra.mxu0 %v1420_v10  ;;  %1264 = vset.pattern.permute.xlu0 %v1332_v45  ;;  %v288_v46 = vand.u32 4294901760, %v287_v34  ;;  %v1511_v48 = vand.u32 4294901760, %v169_v36  ;;  %p1276_p2 = por %p1275_p1, %p1274_p0 }
  0x1d   : > { %149 = vperm.xlu0 %1264, %v139_v26   ;;  %v321_v49 = vand.u32 4294901760, %v1487_v35  ;;  %v1515_v50 = vand.u32 4294901760, %v168_v40  ;;  %v1517_v51 = vand.u32 4294901760, %v167_v41  ;;  %v295_v53 = vand.u32 4294901760, %v294_v38  ;;  %1017 = vmatprep.subr.mxu0 %v1331_v7 }
  0x1e   : > { %1045 = vmatpush3.msra.mxu1 %v274_v37  ;;  %v308_v54 = vsub.f32 %v1464_v24, %v307_v39  ;;  %v1527_v55 = vsub.f32 %v169_v36, %v1511_v48  ;;  %v1529_v56 = vand.u32 4294901760, %v166_v44  ;;  %v315_v57 = vsub.f32 %v1473_v30, %v314_v43  ;;  %1018 = vmatpush3.msra.mxu0 %v1433_v14  ;;  %p1277_p3 = pnand %p1276_p2, %p1270_p13 }
  0x1f   : > { %1046 = vmatprep.subr.mxu1 %v1331_v7  ;;  %v1537_v58 = vsub.f32 %v168_v40, %v1515_v50  ;;  %v302_v60 = vand.u32 4294901760, %v301_v47  ;;  %1019 = vmatprep.subr.mxu0 %v1331_v7  ;;  %v1545_v62 = vsub.f32 %v167_v41, %v1517_v51  ;;  %v1547_v63 = vand.u32 4294901760, %v165_v52 }
  0x20   : > { %1047 = vmatpush3.msra.mxu1 %v281_v42  ;;  %v328_v61 = vand.u32 4294901760, %v1527_v55  ;;  %v322_v0 = vsub.f32 %v1487_v35, %v321_v49  ;;  %1020 = vmatpush3.msra.mxu0 %v1435_v15  ;;  %v309_v4 = vand.u32 4294901760, %v308_v54  ;;  %v1560_v6 = vsub.f32 %v166_v44, %v1529_v56 }
  0x21   : > { %1048 = vmatprep.subr.mxu1 %v1331_v7  ;;  %v335_v5 = vand.u32 4294901760, %v1537_v58  ;;  %1021 = vmatprep.subr.mxu0 %v1331_v7  ;;  %v1562_v11 = vand.u32 4294901760, %v164_v59  ;;  %v316_v12 = vand.u32 4294901760, %v315_v57  ;;  %v342_v26 = vand.u32 4294901760, %v1545_v62 }
  0x22   : > { %1049 = vmatpush3.msra.mxu1 %v288_v46  ;;  %1022 = vmatpush3.msra.mxu0 %v1453_v21  ;;  %v329_v17 = vsub.f32 %v1527_v55, %v328_v61  ;;  %v1575_v31 = vsub.f32 %v165_v52, %v1547_v63  ;;  %v1577_v33 = vand.u32 4294901760, %v163_v1  ;;  %v323_v34 = vand.u32 4294901760, %v322_v0 }
  0x23   : > { %1050 = vmatprep.subr.mxu1 %v1331_v7  ;;  %1023 = vmatprep.subr.mxu0 %v1331_v7  ;;  %v336_v36 = vsub.f32 %v1537_v58, %v335_v5  ;;  %v349_v37 = vand.u32 4294901760, %v1560_v6  ;;  %v1587_v38 = vsub.f32 %v164_v59, %v1562_v11  ;;  %v1589_v40 = vand.u32 4294901760, %v162_v16 }
  0x24   : > { %1051 = vmatpush3.msra.mxu1 %v295_v53  ;;  %1024 = vmatpush3.msra.mxu0 %v1466_v25  ;;  %v330_v41 = vand.u32 4294901760, %v329_v17  ;;  %v343_v42 = vsub.f32 %v1545_v62, %v342_v26  ;;  %v356_v44 = vand.u32 4294901760, %v1575_v31  ;;  %v1599_v45 = vsub.f32 %v163_v1, %v1577_v33 }
  0x25   : > { %1052 = vmatprep.subr.mxu1 %v1331_v7  ;;  %1025 = vmatprep.subr.mxu0 %v1331_v7  ;;  %v337_v46 = vand.u32 4294901760, %v336_v36  ;;  %v350_v47 = vsub.f32 %v1560_v6, %v349_v37  ;;  %v363_v52 = vand.u32 4294901760, %v1587_v38  ;;  %v1609_v53 = vsub.f32 %v162_v16, %v1589_v40 }
  0x26   : > { %1053 = vmatpush3.msra.mxu1 %v302_v60  ;;  %1026 = vmatpush3.msra.mxu0 %v1511_v48  ;;  %v344_v54 = vand.u32 4294901760, %v343_v42  ;;  %v357_v57 = vsub.f32 %v1575_v31, %v356_v44  ;;  %v370_v59 = vand.u32 4294901760, %v1599_v45  ;;  %vm1333_vm0 = vmmov 0  }
  0x27   : > { %1054 = vmatprep.subr.mxu1 %v1331_v7  ;;  %1027 = vmatprep.subr.mxu0 %v1331_v7  ;;  %v351_v60 = vand.u32 4294901760, %v350_v47  ;;  %v364_v0 = vsub.f32 %v1587_v38, %v363_v52  ;;  %v377_v1 = vand.u32 4294901760, %v1609_v53  ;;  %vm819_vm4 = vcmask 261120  }
  0x28   : > { %1055 = vmatpush3.msra.mxu1 %v309_v4  ;;  %1028 = vmatpush3.msra.mxu0 %v1515_v50  ;;  %v358_v4 = vand.u32 4294901760, %v357_v57 }
  0x29   : > { %1056 = vmatprep.subr.mxu1 %v1331_v7  ;;  %1029 = vmatprep.subr.mxu0 %v1331_v7  ;;  %v365_v16 = vand.u32 4294901760, %v364_v0  ;;  %v378_v17 = vsub.f32 %v1609_v53, %v377_v1 }
  0x2a   : > { %1057 = vmatpush3.msra.mxu1 %v316_v12  ;;  %1030 = vmatpush3.msra.mxu0 %v1517_v51  ;;  %v371_v12 = vsub.f32 %v1599_v45, %v370_v59 }
  0x2b   : > { %1058 = vmatprep.subr.mxu1 %v1331_v7  ;;  %1031 = vmatprep.subr.mxu0 %v1331_v7  ;;  %v379_v36 = vand.u32 4294901760, %v378_v17 }
  0x2c   : > { %1059 = vmatpush3.msra.mxu1 %v323_v34  ;;  %1032 = vmatpush3.msra.mxu0 %v1529_v56  ;;  %v372_v34 = vand.u32 4294901760, %v371_v12 }
  0x2d   : > { %1060 = vmatprep.subr.mxu1 %v1331_v7  ;;  %1033 = vmatprep.subr.mxu0 %v1331_v7 }
  0x2e   : > { %1061 = vmatpush3.msra.mxu1 %v330_v41  ;;  %1076 = vmatprep.mubr.msk.f32.mxu1 %vm1333_vm0, %v1331_v7  ;;  %v140_v41 = vlaneseq }
  0x2f   : > { %1062 = vmatprep.subr.mxu1 %v1331_v7  ;;  %1034 = vmatpush3.msra.mxu0 %v1547_v63 }
  0x30   : > { %1063 = vmatpush3.msra.mxu1 %v337_v46  ;;  %1035 = vmatprep.subr.mxu0 %v1331_v7  ;;  %v141_v42 = vand.u32 127, %v140_v41 }
  0x31   : > { %1064 = vmatprep.subr.mxu1 %v1331_v7  ;;  %1036 = vmatpush3.msra.mxu0 %v1562_v11 }
  0x32   : > { %1065 = vmatpush3.msra.mxu1 %v344_v54  ;;  %1037 = vmatprep.subr.mxu0 %v1331_v7 }
  0x33   : > { %1066 = vmatprep.subr.mxu1 %v1331_v7  ;;  %1038 = vmatpush3.msra.mxu0 %v1577_v33 }
  0x34   : > { %1067 = vmatpush3.msra.mxu1 %v351_v60  ;;  %1039 = vmatprep.subr.mxu0 %v1331_v7 }
  0x35   : > { %1068 = vmatprep.subr.mxu1 %v1331_v7  ;;  %1040 = vmatpush3.msra.mxu0 %v1589_v40 }
  0x36   : > { %1069 = vmatpush3.msra.mxu1 %v358_v4  ;;  %1041 = vmatprep.mubr.msk.f32.mxu0 %vm1333_vm0, %v1331_v7 }
  0x37   : > { %1070 = vmatprep.subr.mxu1 %v1331_v7  ;;  %1079 = vmatprep.subr.mxu0 %v1331_v7 }
  0x38   : > { %1071 = vmatpush3.msra.mxu1 %v365_v16  ;;  %1266 = vset.pattern.permute.xlu0 %v1330_v2 }
  0x39   : > { %1072 = vmatprep.subr.mxu1 %v1331_v7 }
  0x3a   : > { %1073 = vmatpush3.msra.mxu1 %v372_v34 }
  0x3b   : > { %1074 = vmatprep.subr.mxu1 %v1331_v7 }
  0x3c   : > { %1075 = vmatpush3.msra.mxu1 %v379_v36 }
  0x3d   : > { %1114 = vmatprep.subr.mxu1 %v1331_v7 }
  0x93   : > { %v144_v46 = vpop.permute.xlu0 %143 }
  0x94   : > { %v157_v47 = vpop.permute.xlu1 %156  ;;  %vm145_vm1 = vcmp.eq.s32.totalorder %v141_v42, %v144_v46 }
  0x95   : > { %vm158_vm2 = vcmp.eq.s32.totalorder %v141_v42, %v157_v47  ;;  %v900_v57 = vsel %vm145_vm1, 1.0, %v1331_v7 }
  0x96   : > { %v902_v0 = vsel %vm158_vm2, 1.0, %v1331_v7 }
  0x98   : > { %v150_v54 = vpop.permute.xlu0 %149 }
  0x99   : > { %vm151_vm3 = vcmp.eq.s32.totalorder %v141_v42, %v150_v54 }
  0x9a   : > { %v901_v60 = vsel %vm151_vm3, 1.0, %v1331_v7 }
  0x9b   : > { %v154_v4 = vadd.f32 %v901_v60, %v900_v57 }
  0x9d   : > { %v161_v12 = vadd.f32 %v902_v0, %v154_v4 }
  0x9f   : > { %v1654_v2 = vand.u32 4294901760, %v161_v12 }
  0xa1   : > { %v1657_v16 = vsub.f32 %v161_v12, %v1654_v2  ;;  %1077 = vmatmul.mubr.f32.vlgmr.msra.gmra.mxu1 %v1654_v2 }
  0xa2   : > { %1115 = vmatpush3.msra.mxu1 %v1403_v3  ;;  %1146 = vmatprep.mubr.msk.f32.mxu1 %vm1333_vm0, %v1331_v7 }
  0xa3   : > { %1116 = vmatprep.subr.mxu1 %v1331_v7  ;;  %v261_v17 = vand.u32 4294901760, %v1657_v16 }
  0xa4   : > { %1117 = vmatpush3.msra.mxu1 %v1416_v8 }
  0xa5   : > { %1118 = vmatprep.subr.mxu1 %v1331_v7  ;;  %v262_v34 = vsub.f32 %v1657_v16, %v261_v17 }
  0xa6   : > { %1119 = vmatpush3.msra.mxu1 %v1418_v9 }
  0xa7   : > { %1120 = vmatprep.subr.mxu1 %v1331_v7  ;;  %v263_v36 = vand.u32 4294901760, %v262_v34 }
  0xa8   : > { %1121 = vmatpush3.msra.mxu1 %v1420_v10 }
  0xa9   : > { %1122 = vmatprep.subr.mxu1 %v1331_v7  ;;  %1042 = vmatmul.mubr.f32.vlgmr.msra.gmra.mxu0 %v263_v36 }
  0xaa   : > { %1080 = vmatpush3.msra.mxu0 %v1430_v13  ;;  %1123 = vmatpush3.msra.mxu1 %v1433_v14 }
  0xab   : > { %1081 = vmatprep.subr.mxu0 %v1331_v7  ;;  %1124 = vmatprep.subr.mxu1 %v1331_v7 }
  0xac   : > { %1082 = vmatpush3.msra.mxu0 %v1444_v18  ;;  %1125 = vmatpush3.msra.mxu1 %v1435_v15 }
  0xad   : > { %1083 = vmatprep.subr.mxu0 %v1331_v7  ;;  %1126 = vmatprep.subr.mxu1 %v1331_v7 }
  0xae   : > { %1084 = vmatpush3.msra.mxu0 %v1447_v19  ;;  %1127 = vmatpush3.msra.mxu1 %v1453_v21 }
  0xaf   : > { %1085 = vmatprep.subr.mxu0 %v1331_v7  ;;  %1128 = vmatprep.subr.mxu1 %v1331_v7 }
  0xb0   : > { %1086 = vmatpush3.msra.mxu0 %v1450_v20  ;;  %1129 = vmatpush3.msra.mxu1 %v1466_v25 }
  0xb1   : > { %1087 = vmatprep.subr.mxu0 %v1331_v7  ;;  %1130 = vmatprep.subr.mxu1 %v1331_v7 }
  0xb2   : > { %1088 = vmatpush3.msra.mxu0 %v1460_v23  ;;  %1131 = vmatpush3.msra.mxu1 %v1511_v48 }
  0xb3   : > { %1089 = vmatprep.subr.mxu0 %v1331_v7  ;;  %1132 = vmatprep.subr.mxu1 %v1331_v7 }
  0xb4   : > { %1090 = vmatpush3.msra.mxu0 %v1464_v24  ;;  %1133 = vmatpush3.msra.mxu1 %v1515_v50 }
  0xb5   : > { %1091 = vmatprep.subr.mxu0 %v1331_v7  ;;  %1134 = vmatprep.subr.mxu1 %v1331_v7 }
  0xb6   : > { %1092 = vmatpush3.msra.mxu0 %v1473_v30  ;;  %1135 = vmatpush3.msra.mxu1 %v1517_v51 }
  0xb7   : > { %1093 = vmatprep.subr.mxu0 %v1331_v7  ;;  %1136 = vmatprep.subr.mxu1 %v1331_v7 }
  0xb8   : > { %1094 = vmatpush3.msra.mxu0 %v1487_v35  ;;  %1137 = vmatpush3.msra.mxu1 %v1529_v56 }
  0xb9   : > { %1095 = vmatprep.subr.mxu0 %v1331_v7  ;;  %1138 = vmatprep.subr.mxu1 %v1331_v7 }
  0xba   : > { %1096 = vmatpush3.msra.mxu0 %v1527_v55  ;;  %1139 = vmatpush3.msra.mxu1 %v1547_v63 }
  0xbb   : > { %1097 = vmatprep.subr.mxu0 %v1331_v7  ;;  %1140 = vmatprep.subr.mxu1 %v1331_v7 }
  0xbc   : > { %1098 = vmatpush3.msra.mxu0 %v1537_v58  ;;  %1141 = vmatpush3.msra.mxu1 %v1562_v11 }
  0xbd   : > { %1099 = vmatprep.subr.mxu0 %v1331_v7  ;;  %1142 = vmatprep.subr.mxu1 %v1331_v7 }
  0xbe   : > { %1100 = vmatpush3.msra.mxu0 %v1545_v62  ;;  %1143 = vmatpush3.msra.mxu1 %v1577_v33 }
  0xbf   : > { %1101 = vmatprep.subr.mxu0 %v1331_v7  ;;  %1144 = vmatprep.subr.mxu1 %v1331_v7 }
  0xc0   : > { %1102 = vmatpush3.msra.mxu0 %v1560_v6  ;;  %1145 = vmatpush3.msra.mxu1 %v1589_v40 }
  0xc1   : > { %1103 = vmatprep.subr.mxu0 %v1331_v7  ;;  %1147 = vmatmul.mubr.f32.vlgmr.msra.gmra.mxu1 %v261_v17 }
  0xc2   : > { %1184 = vmatprep.subr.mxu1 %v1331_v7  ;;  %1104 = vmatpush3.msra.mxu0 %v1575_v31 }
  0xc3   : > { %1185 = vmatpush3.msra.mxu1 %v1403_v3  ;;  %1105 = vmatprep.subr.mxu0 %v1331_v7 }
  0xc4   : > { %1186 = vmatprep.subr.mxu1 %v1331_v7  ;;  %1106 = vmatpush3.msra.mxu0 %v1587_v38 }
  0xc5   : > { %1187 = vmatpush3.msra.mxu1 %v1416_v8  ;;  %1107 = vmatprep.subr.mxu0 %v1331_v7 }
  0xc6   : > { %1188 = vmatprep.subr.mxu1 %v1331_v7  ;;  %1108 = vmatpush3.msra.mxu0 %v1599_v45 }
  0xc7   : > { %1189 = vmatpush3.msra.mxu1 %v1418_v9  ;;  %1109 = vmatprep.subr.mxu0 %v1331_v7 }
  0xc8   : > { %1190 = vmatprep.subr.mxu1 %v1331_v7  ;;  %1110 = vmatpush3.msra.mxu0 %v1609_v53 }
  0xc9   : > { %1111 = vmatprep.mubr.msk.f32.mxu0 %vm1333_vm0, %v1331_v7  ;;  %1191 = vmatpush3.msra.mxu1 %v1420_v10 }
  0xca   : > { %1112 = vmatmul.mubr.f32.vlgmr.msra.gmra.mxu0 %v1657_v16  ;;  %1149 = vmatprep.subr.mxu0 %v1331_v7 }
  0xcb   : > { %1192 = vmatprep.subr.mxu1 %v1331_v7  ;;  %1150 = vmatpush3.msra.mxu0 %v272_v22 }
  0xcc   : > { %1193 = vmatpush3.msra.mxu1 %v1433_v14  ;;  %1151 = vmatprep.subr.mxu0 %v1331_v7 }
  0xcd   : > { %1194 = vmatprep.subr.mxu1 %v1331_v7  ;;  %1152 = vmatpush3.msra.mxu0 %v279_v27 }
  0xce   : > { %1195 = vmatpush3.msra.mxu1 %v1435_v15  ;;  %1153 = vmatprep.subr.mxu0 %v1331_v7 }
  0xcf   : > { %1196 = vmatprep.subr.mxu1 %v1331_v7  ;;  %1154 = vmatpush3.msra.mxu0 %v286_v28 }
  0xd0   : > { %1197 = vmatpush3.msra.mxu1 %v1453_v21  ;;  %1155 = vmatprep.subr.mxu0 %v1331_v7 }
  0xd1   : > { %1198 = vmatprep.subr.mxu1 %v1331_v7  ;;  %1156 = vmatpush3.msra.mxu0 %v293_v29 }
  0xd2   : > { %1199 = vmatpush3.msra.mxu1 %v1466_v25  ;;  %1157 = vmatprep.subr.mxu0 %v1331_v7 }
  0xd3   : > { %1200 = vmatprep.subr.mxu1 %v1331_v7  ;;  %1158 = vmatpush3.msra.mxu0 %v300_v32 }
  0xd4   : > { %1201 = vmatpush3.msra.mxu1 %v1511_v48  ;;  %1159 = vmatprep.subr.mxu0 %v1331_v7 }
  0xd5   : > { %1202 = vmatprep.subr.mxu1 %v1331_v7  ;;  %1160 = vmatpush3.msra.mxu0 %v307_v39 }
  0xd6   : > { %1203 = vmatpush3.msra.mxu1 %v1515_v50  ;;  %1161 = vmatprep.subr.mxu0 %v1331_v7 }
  0xd7   : > { %1204 = vmatprep.subr.mxu1 %v1331_v7  ;;  %1162 = vmatpush3.msra.mxu0 %v314_v43 }
  0xd8   : > { %1205 = vmatpush3.msra.mxu1 %v1517_v51  ;;  %1163 = vmatprep.subr.mxu0 %v1331_v7 }
  0xd9   : > { %1206 = vmatprep.subr.mxu1 %v1331_v7  ;;  %1164 = vmatpush3.msra.mxu0 %v321_v49 }
  0xda   : > { %1207 = vmatpush3.msra.mxu1 %v1529_v56  ;;  %1165 = vmatprep.subr.mxu0 %v1331_v7 }
  0xdb   : > { %1208 = vmatprep.subr.mxu1 %v1331_v7  ;;  %1166 = vmatpush3.msra.mxu0 %v328_v61 }
  0xdc   : > { %1209 = vmatpush3.msra.mxu1 %v1547_v63  ;;  %1167 = vmatprep.subr.mxu0 %v1331_v7 }
  0xdd   : > { %1210 = vmatprep.subr.mxu1 %v1331_v7  ;;  %1168 = vmatpush3.msra.mxu0 %v335_v5 }
  0xde   : > { %1211 = vmatpush3.msra.mxu1 %v1562_v11  ;;  %1169 = vmatprep.subr.mxu0 %v1331_v7 }
  0xdf   : > { %1212 = vmatprep.subr.mxu1 %v1331_v7  ;;  %1170 = vmatpush3.msra.mxu0 %v342_v26 }
  0xe0   : > { %1213 = vmatpush3.msra.mxu1 %v1577_v33  ;;  %1171 = vmatprep.subr.mxu0 %v1331_v7 }
  0xe1   : > { %1214 = vmatprep.subr.mxu1 %v1331_v7  ;;  %1172 = vmatpush3.msra.mxu0 %v349_v37 }
  0xe2   : > { %1215 = vmatpush3.msra.mxu1 %v1589_v40  ;;  %1216 = vmatprep.mubr.msk.f32.mxu1 %vm1333_vm0, %v1331_v7 }
  0xe3   : > { %1173 = vmatprep.subr.mxu0 %v1331_v7  ;;  %1217 = vmatmul.mubr.f32.vlgmr.msra.gmra.mxu1 %v1654_v2 }
  0xe4   : > { %1174 = vmatpush3.msra.mxu0 %v356_v44  ;;  %1181 = vmatprep.mubr.msk.f32.mxu0 %vm1333_vm0, %v1331_v7 }
  0xe5   : > { %1175 = vmatprep.subr.mxu0 %v1331_v7 }
  0xe6   : > { %1176 = vmatpush3.msra.mxu0 %v363_v52 }
  0xe7   : > { %1177 = vmatprep.subr.mxu0 %v1331_v7 }
  0xe8   : > { %1178 = vmatpush3.msra.mxu0 %v370_v59 }
  0xe9   : > { %1179 = vmatprep.subr.mxu0 %v1331_v7 }
  0xea   : > { %1180 = vmatpush3.msra.mxu0 %v377_v1 }
  0xeb   : > { %1182 = vmatmul.mubr.f32.vlgmr.msra.gmra.mxu0 %v1654_v2 }
 0x161   : > { %v416_v3 = vpop.f32.mrf.mxu1 }
 0x163   : > { %v1078_v8 = vpop.f32.mrf.mxu1 }
 0x169   : > { %v265_v9 = vpop.f32.mrf.mxu0 }
 0x16a   : > { %v417_v20 = vadd.f32 %v416_v3, %v265_v9 }
 0x16b   : > { %v1043_v10 = vpop.f32.mrf.mxu0 }
 0x181   : > { %v609_v13 = vpop.f32.mrf.mxu1 }
 0x183   : > { %v1148_v14 = vpop.f32.mrf.mxu1 }
 0x18a   : > { %v520_v15 = vpop.f32.mrf.mxu0 }
 0x18b   : > { %v521_v7 = vadd.f32 %v520_v15, %v417_v20 }
 0x18c   : > { %v1113_v18 = vpop.f32.mrf.mxu0 }
 0x18d   : > { %v610_v22 = vadd.f32 %v609_v13, %v521_v7 }
 0x1a3   : > { %v815_v19 = vpop.f32.mrf.mxu1 }
 0x1a5   : > { %v1218_v21 = vpop.f32.mrf.mxu1 }
 0x1ab   : > { %v728_v23 = vpop.f32.mrf.mxu0 }
 0x1ac   : > { %v729_v24 = vadd.f32 %v728_v23, %v610_v22 }
 0x1ad   : > { %v1183_v25 = vpop.f32.mrf.mxu0 }
 0x1ae   : > { %v816_v27 = vadd.f32 %v815_v19, %v729_v24 }
 0x1b0   : > { %820 = vst.msk [vmem:[%s134_s23] sm:$0xff] %vm819_vm4, %v816_v27 }
 0x1b1   : > { %1280 = shalt.err (!%p1277_p3)
}
 0x1b2   : > { %s1281_s4 = scalar_lea.hbm %s833_s27, 128  ;;  %s1285_s7 = scalar_lea.hbm %s1851_s2, 256 }
 0x1b3   : > { %p1282_p4 = scmp.ne.s32.totalorder %s833_s27, %s1281_s4  ;;  %p1286_p9 = scmp.lt.s32.totalorder %s833_s27, %s1851_s2 }
 0x1b4   : > { %p1287_p10 = scmp.lt.s32.totalorder %s1285_s7, %s1281_s4 }
 0x1b5   : > { %p1283_p7 = pnand %p1282_p4, %p1388_p5 }
 0x1b6   : > { %p1288_p11 = por %p1287_p10, %p1286_p9 }
 0x1b7   : > { %p1284_p8 = pneg %p1283_p7 }
 0x1b9   : > { %p1289_p12 = pnand %p1288_p11, %p1284_p8 }
 0x1bb   : > { %1292 = shalt.err (!%p1289_p12)
}
 0x1bc   : > { %1219 = dma.vmem_to_hbm [thread:$0]  (%p1388_p5), %s836_s24, 128, %s833_s27, %s822_s28  }
 0x1bd PF: > { %p1225_p13 = scmp.ge.s32.totalorder %s1327_s12, 2  ;;  %s847_s16 = sand.u32 1, %s1315_s9  }
 0x1be   : > { %s848_s17 = scalar_lea.sflag [#allocation3], %s847_s16 }
 0x1bf   : > { %p1222_p0 = pnand %p1225_p13, %p1392_p6 }
 0x1c1   : > { %p1223_p1 = pneg %p1222_p0 }
 0x1c3   : > { %1310 = dma.done.wait (%p1223_p1), %s848_s17, 128  }
 0x1c4   : > { %1312 = vsyncadd (%p1223_p1), %s848_s17, 4294967168  ;;  %p12_p2 = scmp.ge.s32.totalorder %s1375_s15, 4   ;;  %s1854_s9 = smov %s1319_s10 }
 0x1c5   : > { %s1855_s10 = smov %s1323_s11  ;;  %s1856_s11 = smov %s1386_s18 }
 0x1c6   : > { %s1857_s12 = smov %s1375_s15  ;;  %14 = sbr.rel (!%p12_p2) target bundleno = 3 (0x3), region = 63 }
 0x1cb   :  { %853 = vsyncpa [#allocation3], 1 }
 0x1cc   :  { %855 = vsyncpa [#allocation3 + $0x1], 1 }

</bundles_post_ra>
